<compile_context>
chip_gen: v5e
topology: v5e:2x2
jax: 0.10.0
libtpu: 0.0.40
codegen_flags: <defaults>
</compile_context>

<pallas_src>
import functools

import jax
import jax.numpy as jnp
import numpy as np
from jax.experimental import pallas as pl
from jax.experimental.pallas import tpu as pltpu


def _adaptive_reg_kernel(x_ref, wpos_ref, out_ref, *,
                         D, H, W, lambda_base, mu_base,
                         beta_adaptive, beta_norm, threshold):
    HW = H * W
    lane = jax.lax.broadcasted_iota(jnp.int32, (D, HW), 1)    # position in H*W
    depth = jax.lax.broadcasted_iota(jnp.int32, (D, HW), 0)   # sublane (depth)
    wpos = jnp.broadcast_to(wpos_ref[...], (D, HW))           # lane % W (hoisted)

    # torch.gradient edge_order=1 boundary masks, computed once per grid step.
    w_first, w_last = wpos == 0, wpos == W - 1
    h_first, h_last = lane < W, lane >= HW - W
    d_first, d_last = depth == 0, depth == D - 1

    def edge_grad(f, nxt, prv, first_m, last_m):
        # one-sided difference at the two edges, central difference inside.
        return jnp.where(first_m, nxt - f,
                         jnp.where(last_m, f - prv, 0.5 * (nxt - prv)))

    grads = []
    sq_norm = jnp.zeros((D, HW), jnp.float32)
    for c in range(3):                                         # u, v, w
        f = x_ref[0, c]                                        # (D, HW), lane-dense
        # Circular shifts; the wrapped rows/lanes are masked out by edge_grad.
        nxt_w = pltpu.roll(f, HW - 1, axis=1)                  # f[..., i+1]
        prv_w = pltpu.roll(f, 1, axis=1)                       # f[..., i-1]
        nxt_h = pltpu.roll(f, HW - W, axis=1)                  # f[..., i+W]  (h+1)
        prv_h = pltpu.roll(f, W, axis=1)                       # f[..., i-W]  (h-1)
        nxt_d = pltpu.roll(f, D - 1, axis=0)                   # f[d+1, ...]
        prv_d = pltpu.roll(f, 1, axis=0)                       # f[d-1, ...]

        g_d = edge_grad(f, nxt_d, prv_d, d_first, d_last)      # d(comp c)/dD
        g_h = edge_grad(f, nxt_h, prv_h, h_first, h_last)      # d(comp c)/dH
        g_w = edge_grad(f, nxt_w, prv_w, w_first, w_last)      # d(comp c)/dW

        sq_norm = sq_norm + g_d * g_d + g_h * g_h + g_w * g_w
        grads.append((g_d, g_h, g_w))

    (du_d, du_h, du_w) = grads[0]   # torch dfdx (component 0)
    (dv_d, dv_h, dv_w) = grads[1]   # torch dfdy (component 1)
    (dw_d, dw_h, dw_w) = grads[2]   # torch dfdz (component 2)

    grad_norm = jnp.sqrt(sq_norm)
    # lambda_strain = lambda_base * factor, mu_shear = mu_base * factor.
    factor = 1.0 + beta_norm * jnp.exp(-grad_norm / threshold)

    e_xx, e_yy, e_zz = du_d, dv_h, dw_w
    e_xy = 0.5 * (du_h + dv_d)
    e_xz = 0.5 * (du_w + dw_d)
    e_yz = 0.5 * (dv_w + dw_h)
    tr = e_xx + e_yy + e_zz

    base_energy = ((0.5 * lambda_base) * tr * tr
                   + mu_base * (e_xx * e_xx + e_yy * e_yy + e_zz * e_zz
                                + 2.0 * (e_xy * e_xy + e_xz * e_xz + e_yz * e_yz)))
    energy = factor * base_energy
    adaptive_w = 1.0 + beta_adaptive * jnp.exp(-grad_norm)
    reg_sum = jnp.sum(adaptive_w * energy)

    jac = (du_d * (dv_h * dw_w - dv_w * dw_h)
           - du_h * (dv_d * dw_w - dv_w * dw_d)
           + du_w * (dv_d * dw_h - dv_h * dw_d))
    neg = jnp.maximum(-jac, 0.0)
    fold_sum = jnp.sum(neg * neg)

    out_lane = jax.lax.broadcasted_iota(jnp.int32, (1, 1, 128), 2)
    out_ref[...] = (jnp.where(out_lane == 0, reg_sum, 0.0)
                    + jnp.where(out_lane == 1, fold_sum, 0.0))


def adaptive_regularization_loss(deformation_field, volume=None, *,
                                 lambda_base, mu_base, lambda_folding=10.0,
                                 beta_adaptive=1.0, beta_norm=1.0,
                                 threshold=0.1):
    del volume  # unused by the PyTorch forward as well
    x = deformation_field.astype(jnp.float32)
    B, C, D, H, W = x.shape
    assert C == 3, "deformation field must have 3 components"
    HW = H * W
    x_flat = x.reshape(B, 3, D, HW)            # contiguous -> free reshape

    # Tiny (1, HW) lane-position table (lane % W); broadcast inside the kernel.
    wpos = jnp.asarray((np.arange(HW, dtype=np.int32) % W).reshape(1, HW))

    kernel = functools.partial(
        _adaptive_reg_kernel, D=D, H=H, W=W,
        lambda_base=float(lambda_base), mu_base=float(mu_base),
        beta_adaptive=float(beta_adaptive), beta_norm=float(beta_norm),
        threshold=float(threshold))

    sums = pl.pallas_call(
        kernel,
        out_shape=jax.ShapeDtypeStruct((B, 1, 128), jnp.float32),
        grid_spec=pltpu.PrefetchScalarGridSpec(
            num_scalar_prefetch=0,
            grid=(B,),
            in_specs=[
                pl.BlockSpec((1, 3, D, HW), lambda b: (b, 0, 0, 0)),
                pl.BlockSpec((1, HW), lambda b: (0, 0)),
            ],
            out_specs=pl.BlockSpec((1, 1, 128), lambda b: (b, 0, 0)),
        ),
        compiler_params=pltpu.CompilerParams(
            dimension_semantics=("parallel",),
            vmem_limit_bytes=48 * 1024 * 1024),
    )(x_flat, wpos)

    n_vox = float(B * D * H * W)
    reg_mean = jnp.sum(sums[:, 0, 0]) / n_vox
    fold_mean = jnp.sum(sums[:, 0, 1]) / n_vox
    return reg_mean + lambda_folding * fold_mean


# ----------------------------- pure-JAX reference -----------------------------
def _ref_gradient(f, axis):
    n = f.shape[axis]

    def sl(a, b):
        idx = [slice(None)] * f.ndim
        idx[axis] = slice(a, b)
        return f[tuple(idx)]

    first = sl(1, 2) - sl(0, 1)
    inter = 0.5 * (sl(2, n) - sl(0, n - 2))
    last = sl(n - 1, n) - sl(n - 2, n - 1)
    return jnp.concatenate([first, inter, last], axis=axis)


def _ref_loss(deformation_field, volume, *, lambda_base, mu_base,
              lambda_folding=10.0, beta_adaptive=1.0, beta_norm=1.0,
              threshold=0.1):
    del volume
    x = deformation_field.astype(jnp.float32)
    dfdx = [_ref_gradient(x[:, 0], a) for a in (1, 2, 3)]
    dfdy = [_ref_gradient(x[:, 1], a) for a in (1, 2, 3)]
    dfdz = [_ref_gradient(x[:, 2], a) for a in (1, 2, 3)]

    gn = jnp.sqrt(dfdx[0] ** 2 + dfdy[0] ** 2 + dfdz[0] ** 2
                  + dfdx[1] ** 2 + dfdy[1] ** 2 + dfdz[1] ** 2
                  + dfdx[2] ** 2 + dfdy[2] ** 2 + dfdz[2] ** 2)
    lam = lambda_base * (1 + beta_norm * jnp.exp(-gn / threshold))
    mu = mu_base * (1 + beta_norm * jnp.exp(-gn / threshold))

    E_xx, E_yy, E_zz = dfdx[0], dfdy[1], dfdz[2]
    E_xy = 0.5 * (dfdx[1] + dfdy[0])
    E_xz = 0.5 * (dfdx[2] + dfdz[0])
    E_yz = 0.5 * (dfdy[2] + dfdz[1])
    tr = E_xx + E_yy + E_zz

    energy = (0.5 * lam * tr ** 2
              + mu * (E_xx ** 2 + E_yy ** 2 + E_zz ** 2
                      + 2.0 * (E_xy ** 2 + E_xz ** 2 + E_yz ** 2)))
    adaptive = (1 + beta_adaptive * jnp.exp(-gn)) * energy

    jac = (dfdx[0] * (dfdy[1] * dfdz[2] - dfdy[2] * dfdz[1])
           - dfdx[1] * (dfdy[0] * dfdz[2] - dfdy[2] * dfdz[0])
           + dfdx[2] * (dfdy[0] * dfdz[1] - dfdy[1] * dfdz[0]))
    fold = jnp.mean(jnp.maximum(-jac, 0.0) ** 2)
    return jnp.mean(adaptive) + lambda_folding * fold


if __name__ == "__main__":
    key = jax.random.PRNGKey(0)
    k1, k2 = jax.random.split(key)
    B, C, D, H, W = 2, 3, 8, 16, 16
    deformation_field = jax.random.normal(k1, (B, C, D, H, W), dtype=jnp.float32)
    volume = jax.random.normal(k2, (B, 1, D, H, W), dtype=jnp.float32)

    params = dict(lambda_base=1.0, mu_base=0.5, lambda_folding=10.0,
                  beta_adaptive=1.0, beta_norm=1.0, threshold=0.1)

    loss = adaptive_regularization_loss(deformation_field, volume, **params)
    loss = jax.block_until_ready(loss)

    ref = jax.block_until_ready(_ref_loss(deformation_field, volume, **params))
    np.testing.assert_allclose(np.asarray(loss), np.asarray(ref),
                               rtol=1e-3, atol=1e-5)
    print("KERNEL_OK")
</pallas_src>

<mosaic_0001>
module attributes {stable_mosaic.version = 11 : i64} {
  func.func @_adaptive_reg_kernel(%arg0: i32, %arg1: memref<1x3x8x256xf32, #tpu.memory_space<vmem>>, %arg2: memref<1x256xi32, #tpu.memory_space<vmem>>, %arg3: memref<1x1x128xf32, #tpu.memory_space<vmem>>) attributes {dimension_semantics = [#tpu.dimension_semantics<parallel>], iteration_bounds = array<i64: 2>, scalar_prefetch = 0 : i64, scratch_operands = 0 : i64, tpu.core_type = #tpu.core_type<tc>, window_params = [{transform_indices = @transform_0, window_bounds = array<i64: 1, 3, 8, 256>}, {pipeline_mode = #tpu.pipeline_mode<synchronous>, transform_indices = @transform_1, window_bounds = array<i64: 1, 256>}, {transform_indices = @transform_2, window_bounds = array<i64: 1, 1, 128>}]} {
    %0 = tpu.iota {dimensions = array<i32: 1>} : vector<8x256xi32>
    %1 = tpu.iota {dimensions = array<i32: 0>} : vector<8x256xi32>
    %c0 = arith.constant 0 : index
    %c0_0 = arith.constant 0 : index
    %2 = vector.load %arg2[%c0, %c0_0] : memref<1x256xi32, #tpu.memory_space<vmem>>, vector<1x256xi32>
    %3 = vector.shape_cast %2 : vector<1x256xi32> to vector<1x256xi32>
    %4 = vector.broadcast %3 : vector<1x256xi32> to vector<8x256xi32>
    %c0_i32 = arith.constant 0 : i32
    %5 = vector.broadcast %c0_i32 : i32 to vector<8x256xi32>
    %6 = arith.cmpi eq, %4, %5 : vector<8x256xi32>
    %c15_i32 = arith.constant 15 : i32
    %7 = vector.broadcast %c15_i32 : i32 to vector<8x256xi32>
    %8 = arith.cmpi eq, %4, %7 : vector<8x256xi32>
    %c16_i32 = arith.constant 16 : i32
    %9 = vector.broadcast %c16_i32 : i32 to vector<8x256xi32>
    %10 = arith.cmpi slt, %0, %9 : vector<8x256xi32>
    %c240_i32 = arith.constant 240 : i32
    %11 = vector.broadcast %c240_i32 : i32 to vector<8x256xi32>
    %12 = arith.cmpi sge, %0, %11 : vector<8x256xi32>
    %c0_i32_1 = arith.constant 0 : i32
    %13 = vector.broadcast %c0_i32_1 : i32 to vector<8x256xi32>
    %14 = arith.cmpi eq, %1, %13 : vector<8x256xi32>
    %c7_i32 = arith.constant 7 : i32
    %15 = vector.broadcast %c7_i32 : i32 to vector<8x256xi32>
    %16 = arith.cmpi eq, %1, %15 : vector<8x256xi32>
    %cst = arith.constant 0.000000e+00 : f32
    %17 = vector.broadcast %cst : f32 to vector<8x256xf32>
    %c0_2 = arith.constant 0 : index
    %c0_3 = arith.constant 0 : index
    %c0_4 = arith.constant 0 : index
    %c0_5 = arith.constant 0 : index
    %18 = vector.load %arg1[%c0_2, %c0_3, %c0_4, %c0_5] : memref<1x3x8x256xf32, #tpu.memory_space<vmem>>, vector<1x1x8x256xf32>
    %19 = vector.shape_cast %18 : vector<1x1x8x256xf32> to vector<8x256xf32>
    %c255_i32 = arith.constant 255 : i32
    %20 = tpu.dynamic_rotate %19 by %c255_i32 dim 1 : vector<8x256xf32>, i32 -> vector<8x256xf32>
    %c1_i32 = arith.constant 1 : i32
    %21 = tpu.dynamic_rotate %19 by %c1_i32 dim 1 : vector<8x256xf32>, i32 -> vector<8x256xf32>
    %c240_i32_6 = arith.constant 240 : i32
    %22 = tpu.dynamic_rotate %19 by %c240_i32_6 dim 1 : vector<8x256xf32>, i32 -> vector<8x256xf32>
    %c16_i32_7 = arith.constant 16 : i32
    %23 = tpu.dynamic_rotate %19 by %c16_i32_7 dim 1 : vector<8x256xf32>, i32 -> vector<8x256xf32>
    %c7_i32_8 = arith.constant 7 : i32
    %24 = tpu.dynamic_rotate %19 by %c7_i32_8 dim 0 : vector<8x256xf32>, i32 -> vector<8x256xf32>
    %c1_i32_9 = arith.constant 1 : i32
    %25 = tpu.dynamic_rotate %19 by %c1_i32_9 dim 0 : vector<8x256xf32>, i32 -> vector<8x256xf32>
    %26 = arith.subf %24, %19 : vector<8x256xf32>
    %27 = arith.subf %19, %25 : vector<8x256xf32>
    %28 = arith.subf %24, %25 : vector<8x256xf32>
    %cst_10 = arith.constant 5.000000e-01 : f32
    %29 = vector.broadcast %cst_10 : f32 to vector<8x256xf32>
    %30 = arith.mulf %29, %28 : vector<8x256xf32>
    %31 = arith.select %16, %27, %30 : vector<8x256xi1>, vector<8x256xf32>
    %32 = arith.select %14, %26, %31 : vector<8x256xi1>, vector<8x256xf32>
    %33 = arith.subf %22, %19 : vector<8x256xf32>
    %34 = arith.subf %19, %23 : vector<8x256xf32>
    %35 = arith.subf %22, %23 : vector<8x256xf32>
    %cst_11 = arith.constant 5.000000e-01 : f32
    %36 = vector.broadcast %cst_11 : f32 to vector<8x256xf32>
    %37 = arith.mulf %36, %35 : vector<8x256xf32>
    %38 = arith.select %12, %34, %37 : vector<8x256xi1>, vector<8x256xf32>
    %39 = arith.select %10, %33, %38 : vector<8x256xi1>, vector<8x256xf32>
    %40 = arith.subf %20, %19 : vector<8x256xf32>
    %41 = arith.subf %19, %21 : vector<8x256xf32>
    %42 = arith.subf %20, %21 : vector<8x256xf32>
    %cst_12 = arith.constant 5.000000e-01 : f32
    %43 = vector.broadcast %cst_12 : f32 to vector<8x256xf32>
    %44 = arith.mulf %43, %42 : vector<8x256xf32>
    %45 = arith.select %8, %41, %44 : vector<8x256xi1>, vector<8x256xf32>
    %46 = arith.select %6, %40, %45 : vector<8x256xi1>, vector<8x256xf32>
    %47 = arith.mulf %32, %32 : vector<8x256xf32>
    %48 = arith.addf %17, %47 : vector<8x256xf32>
    %49 = arith.mulf %39, %39 : vector<8x256xf32>
    %50 = arith.addf %48, %49 : vector<8x256xf32>
    %51 = arith.mulf %46, %46 : vector<8x256xf32>
    %52 = arith.addf %50, %51 : vector<8x256xf32>
    %c0_13 = arith.constant 0 : index
    %c1 = arith.constant 1 : index
    %c0_14 = arith.constant 0 : index
    %c0_15 = arith.constant 0 : index
    %53 = vector.load %arg1[%c0_13, %c1, %c0_14, %c0_15] : memref<1x3x8x256xf32, #tpu.memory_space<vmem>>, vector<1x1x8x256xf32>
    %54 = vector.shape_cast %53 : vector<1x1x8x256xf32> to vector<8x256xf32>
    %c255_i32_16 = arith.constant 255 : i32
    %55 = tpu.dynamic_rotate %54 by %c255_i32_16 dim 1 : vector<8x256xf32>, i32 -> vector<8x256xf32>
    %c1_i32_17 = arith.constant 1 : i32
    %56 = tpu.dynamic_rotate %54 by %c1_i32_17 dim 1 : vector<8x256xf32>, i32 -> vector<8x256xf32>
    %c240_i32_18 = arith.constant 240 : i32
    %57 = tpu.dynamic_rotate %54 by %c240_i32_18 dim 1 : vector<8x256xf32>, i32 -> vector<8x256xf32>
    %c16_i32_19 = arith.constant 16 : i32
    %58 = tpu.dynamic_rotate %54 by %c16_i32_19 dim 1 : vector<8x256xf32>, i32 -> vector<8x256xf32>
    %c7_i32_20 = arith.constant 7 : i32
    %59 = tpu.dynamic_rotate %54 by %c7_i32_20 dim 0 : vector<8x256xf32>, i32 -> vector<8x256xf32>
    %c1_i32_21 = arith.constant 1 : i32
    %60 = tpu.dynamic_rotate %54 by %c1_i32_21 dim 0 : vector<8x256xf32>, i32 -> vector<8x256xf32>
    %61 = arith.subf %59, %54 : vector<8x256xf32>
    %62 = arith.subf %54, %60 : vector<8x256xf32>
    %63 = arith.subf %59, %60 : vector<8x256xf32>
    %cst_22 = arith.constant 5.000000e-01 : f32
    %64 = vector.broadcast %cst_22 : f32 to vector<8x256xf32>
    %65 = arith.mulf %64, %63 : vector<8x256xf32>
    %66 = arith.select %16, %62, %65 : vector<8x256xi1>, vector<8x256xf32>
    %67 = arith.select %14, %61, %66 : vector<8x256xi1>, vector<8x256xf32>
    %68 = arith.subf %57, %54 : vector<8x256xf32>
    %69 = arith.subf %54, %58 : vector<8x256xf32>
    %70 = arith.subf %57, %58 : vector<8x256xf32>
    %cst_23 = arith.constant 5.000000e-01 : f32
    %71 = vector.broadcast %cst_23 : f32 to vector<8x256xf32>
    %72 = arith.mulf %71, %70 : vector<8x256xf32>
    %73 = arith.select %12, %69, %72 : vector<8x256xi1>, vector<8x256xf32>
    %74 = arith.select %10, %68, %73 : vector<8x256xi1>, vector<8x256xf32>
    %75 = arith.subf %55, %54 : vector<8x256xf32>
    %76 = arith.subf %54, %56 : vector<8x256xf32>
    %77 = arith.subf %55, %56 : vector<8x256xf32>
    %cst_24 = arith.constant 5.000000e-01 : f32
    %78 = vector.broadcast %cst_24 : f32 to vector<8x256xf32>
    %79 = arith.mulf %78, %77 : vector<8x256xf32>
    %80 = arith.select %8, %76, %79 : vector<8x256xi1>, vector<8x256xf32>
    %81 = arith.select %6, %75, %80 : vector<8x256xi1>, vector<8x256xf32>
    %82 = arith.mulf %67, %67 : vector<8x256xf32>
    %83 = arith.addf %52, %82 : vector<8x256xf32>
    %84 = arith.mulf %74, %74 : vector<8x256xf32>
    %85 = arith.addf %83, %84 : vector<8x256xf32>
    %86 = arith.mulf %81, %81 : vector<8x256xf32>
    %87 = arith.addf %85, %86 : vector<8x256xf32>
    %c0_25 = arith.constant 0 : index
    %c2 = arith.constant 2 : index
    %c0_26 = arith.constant 0 : index
    %c0_27 = arith.constant 0 : index
    %88 = vector.load %arg1[%c0_25, %c2, %c0_26, %c0_27] : memref<1x3x8x256xf32, #tpu.memory_space<vmem>>, vector<1x1x8x256xf32>
    %89 = vector.shape_cast %88 : vector<1x1x8x256xf32> to vector<8x256xf32>
    %c255_i32_28 = arith.constant 255 : i32
    %90 = tpu.dynamic_rotate %89 by %c255_i32_28 dim 1 : vector<8x256xf32>, i32 -> vector<8x256xf32>
    %c1_i32_29 = arith.constant 1 : i32
    %91 = tpu.dynamic_rotate %89 by %c1_i32_29 dim 1 : vector<8x256xf32>, i32 -> vector<8x256xf32>
    %c240_i32_30 = arith.constant 240 : i32
    %92 = tpu.dynamic_rotate %89 by %c240_i32_30 dim 1 : vector<8x256xf32>, i32 -> vector<8x256xf32>
    %c16_i32_31 = arith.constant 16 : i32
    %93 = tpu.dynamic_rotate %89 by %c16_i32_31 dim 1 : vector<8x256xf32>, i32 -> vector<8x256xf32>
    %c7_i32_32 = arith.constant 7 : i32
    %94 = tpu.dynamic_rotate %89 by %c7_i32_32 dim 0 : vector<8x256xf32>, i32 -> vector<8x256xf32>
    %c1_i32_33 = arith.constant 1 : i32
    %95 = tpu.dynamic_rotate %89 by %c1_i32_33 dim 0 : vector<8x256xf32>, i32 -> vector<8x256xf32>
    %96 = arith.subf %94, %89 : vector<8x256xf32>
    %97 = arith.subf %89, %95 : vector<8x256xf32>
    %98 = arith.subf %94, %95 : vector<8x256xf32>
    %cst_34 = arith.constant 5.000000e-01 : f32
    %99 = vector.broadcast %cst_34 : f32 to vector<8x256xf32>
    %100 = arith.mulf %99, %98 : vector<8x256xf32>
    %101 = arith.select %16, %97, %100 : vector<8x256xi1>, vector<8x256xf32>
    %102 = arith.select %14, %96, %101 : vector<8x256xi1>, vector<8x256xf32>
    %103 = arith.subf %92, %89 : vector<8x256xf32>
    %104 = arith.subf %89, %93 : vector<8x256xf32>
    %105 = arith.subf %92, %93 : vector<8x256xf32>
    %cst_35 = arith.constant 5.000000e-01 : f32
    %106 = vector.broadcast %cst_35 : f32 to vector<8x256xf32>
    %107 = arith.mulf %106, %105 : vector<8x256xf32>
    %108 = arith.select %12, %104, %107 : vector<8x256xi1>, vector<8x256xf32>
    %109 = arith.select %10, %103, %108 : vector<8x256xi1>, vector<8x256xf32>
    %110 = arith.subf %90, %89 : vector<8x256xf32>
    %111 = arith.subf %89, %91 : vector<8x256xf32>
    %112 = arith.subf %90, %91 : vector<8x256xf32>
    %cst_36 = arith.constant 5.000000e-01 : f32
    %113 = vector.broadcast %cst_36 : f32 to vector<8x256xf32>
    %114 = arith.mulf %113, %112 : vector<8x256xf32>
    %115 = arith.select %8, %111, %114 : vector<8x256xi1>, vector<8x256xf32>
    %116 = arith.select %6, %110, %115 : vector<8x256xi1>, vector<8x256xf32>
    %117 = arith.mulf %102, %102 : vector<8x256xf32>
    %118 = arith.addf %87, %117 : vector<8x256xf32>
    %119 = arith.mulf %109, %109 : vector<8x256xf32>
    %120 = arith.addf %118, %119 : vector<8x256xf32>
    %121 = arith.mulf %116, %116 : vector<8x256xf32>
    %122 = arith.addf %120, %121 : vector<8x256xf32>
    %123 = math.sqrt %122 : vector<8x256xf32>
    %cst_37 = arith.constant 0.000000e+00 : f32
    %124 = vector.broadcast %cst_37 : f32 to vector<8x256xf32>
    %125 = arith.subf %124, %123 : vector<8x256xf32>
    %cst_38 = arith.constant 1.000000e-01 : f32
    %126 = vector.broadcast %cst_38 : f32 to vector<8x256xf32>
    %127 = arith.divf %125, %126 : vector<8x256xf32>
    %128 = math.exp %127 : vector<8x256xf32>
    %cst_39 = arith.constant 1.000000e+00 : f32
    %129 = vector.broadcast %cst_39 : f32 to vector<8x256xf32>
    %130 = arith.mulf %129, %128 : vector<8x256xf32>
    %cst_40 = arith.constant 1.000000e+00 : f32
    %131 = vector.broadcast %cst_40 : f32 to vector<8x256xf32>
    %132 = arith.addf %131, %130 : vector<8x256xf32>
    %133 = arith.addf %39, %67 : vector<8x256xf32>
    %cst_41 = arith.constant 5.000000e-01 : f32
    %134 = vector.broadcast %cst_41 : f32 to vector<8x256xf32>
    %135 = arith.mulf %134, %133 : vector<8x256xf32>
    %136 = arith.addf %46, %102 : vector<8x256xf32>
    %cst_42 = arith.constant 5.000000e-01 : f32
    %137 = vector.broadcast %cst_42 : f32 to vector<8x256xf32>
    %138 = arith.mulf %137, %136 : vector<8x256xf32>
    %139 = arith.addf %81, %109 : vector<8x256xf32>
    %cst_43 = arith.constant 5.000000e-01 : f32
    %140 = vector.broadcast %cst_43 : f32 to vector<8x256xf32>
    %141 = arith.mulf %140, %139 : vector<8x256xf32>
    %142 = arith.addf %32, %74 : vector<8x256xf32>
    %143 = arith.addf %142, %116 : vector<8x256xf32>
    %cst_44 = arith.constant 5.000000e-01 : f32
    %144 = vector.broadcast %cst_44 : f32 to vector<8x256xf32>
    %145 = arith.mulf %144, %143 : vector<8x256xf32>
    %146 = arith.mulf %145, %143 : vector<8x256xf32>
    %147 = arith.mulf %32, %32 : vector<8x256xf32>
    %148 = arith.mulf %74, %74 : vector<8x256xf32>
    %149 = arith.addf %147, %148 : vector<8x256xf32>
    %150 = arith.mulf %116, %116 : vector<8x256xf32>
    %151 = arith.addf %149, %150 : vector<8x256xf32>
    %152 = arith.mulf %135, %135 : vector<8x256xf32>
    %153 = arith.mulf %138, %138 : vector<8x256xf32>
    %154 = arith.addf %152, %153 : vector<8x256xf32>
    %155 = arith.mulf %141, %141 : vector<8x256xf32>
    %156 = arith.addf %154, %155 : vector<8x256xf32>
    %cst_45 = arith.constant 2.000000e+00 : f32
    %157 = vector.broadcast %cst_45 : f32 to vector<8x256xf32>
    %158 = arith.mulf %157, %156 : vector<8x256xf32>
    %159 = arith.addf %151, %158 : vector<8x256xf32>
    %cst_46 = arith.constant 5.000000e-01 : f32
    %160 = vector.broadcast %cst_46 : f32 to vector<8x256xf32>
    %161 = arith.mulf %160, %159 : vector<8x256xf32>
    %162 = arith.addf %146, %161 : vector<8x256xf32>
    %163 = arith.mulf %132, %162 : vector<8x256xf32>
    %cst_47 = arith.constant 0.000000e+00 : f32
    %164 = vector.broadcast %cst_47 : f32 to vector<8x256xf32>
    %165 = arith.subf %164, %123 : vector<8x256xf32>
    %166 = math.exp %165 : vector<8x256xf32>
    %cst_48 = arith.constant 1.000000e+00 : f32
    %167 = vector.broadcast %cst_48 : f32 to vector<8x256xf32>
    %168 = arith.mulf %167, %166 : vector<8x256xf32>
    %cst_49 = arith.constant 1.000000e+00 : f32
    %169 = vector.broadcast %cst_49 : f32 to vector<8x256xf32>
    %170 = arith.addf %169, %168 : vector<8x256xf32>
    %171 = arith.mulf %170, %163 : vector<8x256xf32>
    %172 = vector.shape_cast %171 : vector<8x256xf32> to vector<1x8x256xf32>
    %cst_50 = arith.constant dense<0.000000e+00> : vector<1xf32>
    %173 = vector.multi_reduction <add>, %172, %cst_50 [1, 2] : vector<1x8x256xf32> to vector<1xf32>
    %174 = vector.shape_cast %173 : vector<1xf32> to vector<1x1x1xf32>
    %175 = vector.extract %174[0, 0, 0] : f32 from vector<1x1x1xf32>
    %176 = arith.mulf %74, %116 : vector<8x256xf32>
    %177 = arith.mulf %81, %109 : vector<8x256xf32>
    %178 = arith.subf %176, %177 : vector<8x256xf32>
    %179 = arith.mulf %32, %178 : vector<8x256xf32>
    %180 = arith.mulf %67, %116 : vector<8x256xf32>
    %181 = arith.mulf %81, %102 : vector<8x256xf32>
    %182 = arith.subf %180, %181 : vector<8x256xf32>
    %183 = arith.mulf %39, %182 : vector<8x256xf32>
    %184 = arith.subf %179, %183 : vector<8x256xf32>
    %185 = arith.mulf %67, %109 : vector<8x256xf32>
    %186 = arith.mulf %74, %102 : vector<8x256xf32>
    %187 = arith.subf %185, %186 : vector<8x256xf32>
    %188 = arith.mulf %46, %187 : vector<8x256xf32>
    %189 = arith.addf %184, %188 : vector<8x256xf32>
    %cst_51 = arith.constant 0.000000e+00 : f32
    %190 = vector.broadcast %cst_51 : f32 to vector<8x256xf32>
    %191 = arith.subf %190, %189 : vector<8x256xf32>
    %cst_52 = arith.constant 0.000000e+00 : f32
    %192 = vector.broadcast %cst_52 : f32 to vector<8x256xf32>
    %193 = arith.maximumf %191, %192 : vector<8x256xf32>
    %194 = arith.mulf %193, %193 : vector<8x256xf32>
    %195 = vector.shape_cast %194 : vector<8x256xf32> to vector<1x8x256xf32>
    %cst_53 = arith.constant dense<0.000000e+00> : vector<1xf32>
    %196 = vector.multi_reduction <add>, %195, %cst_53 [1, 2] : vector<1x8x256xf32> to vector<1xf32>
    %197 = vector.shape_cast %196 : vector<1xf32> to vector<1x1x1xf32>
    %198 = vector.extract %197[0, 0, 0] : f32 from vector<1x1x1xf32>
    %199 = tpu.iota {dimensions = array<i32: 2>} : vector<1x1x128xi32>
    %c0_i32_54 = arith.constant 0 : i32
    %200 = vector.broadcast %c0_i32_54 : i32 to vector<1x1x128xi32>
    %201 = arith.cmpi eq, %199, %200 : vector<1x1x128xi32>
    %cst_55 = arith.constant 0.000000e+00 : f32
    %202 = vector.broadcast %175 : f32 to vector<1x1x128xf32>
    %203 = vector.broadcast %cst_55 : f32 to vector<1x1x128xf32>
    %204 = arith.select %201, %202, %203 : vector<1x1x128xi1>, vector<1x1x128xf32>
    %c1_i32_56 = arith.constant 1 : i32
    %205 = vector.broadcast %c1_i32_56 : i32 to vector<1x1x128xi32>
    %206 = arith.cmpi eq, %199, %205 : vector<1x1x128xi32>
    %cst_57 = arith.constant 0.000000e+00 : f32
    %207 = vector.broadcast %198 : f32 to vector<1x1x128xf32>
    %208 = vector.broadcast %cst_57 : f32 to vector<1x1x128xf32>
    %209 = arith.select %206, %207, %208 : vector<1x1x128xi1>, vector<1x1x128xf32>
    %210 = arith.addf %204, %209 : vector<1x1x128xf32>
    %c0_58 = arith.constant 0 : index
    %c0_59 = arith.constant 0 : index
    %c0_60 = arith.constant 0 : index
    %211 = vector.load %arg3[%c0_58, %c0_59, %c0_60] : memref<1x1x128xf32, #tpu.memory_space<vmem>>, vector<1x1x128xf32>
    tpu.vector_store %arg3[%c0_58, %c0_59, %c0_60], %210 {strides = array<i32>} : memref<1x1x128xf32, #tpu.memory_space<vmem>>, vector<1x1x128xf32>,
    return
  }
  func.func @transform_0(%arg0: i32) -> (i32, i32, i32, i32) {
    %c0_i32 = arith.constant 0 : i32
    %c0_i32_0 = arith.constant 0 : i32
    %c0_i32_1 = arith.constant 0 : i32
    %c0_i32_2 = arith.constant 0 : i32
    return %arg0, %c0_i32, %c0_i32_0, %c0_i32_1 : i32, i32, i32, i32
  }
  func.func @transform_1(%arg0: i32) -> (i32, i32) {
    %c0_i32 = arith.constant 0 : i32
    %c0_i32_0 = arith.constant 0 : i32
    %c0_i32_1 = arith.constant 0 : i32
    return %c0_i32, %c0_i32_0 : i32, i32
  }
  func.func @transform_2(%arg0: i32) -> (i32, i32, i32) {
    %c0_i32 = arith.constant 0 : i32
    %c0_i32_0 = arith.constant 0 : i32
    %c0_i32_1 = arith.constant 0 : i32
    return %arg0, %c0_i32, %c0_i32_0 : i32, i32, i32
  }
}

</mosaic_0001>

<bundles_post_ra>
// kernel: tpu_custom_call.1
= control target key start
LH: loop header
LB: loop body
LE: loop exit
PB: predicated region body
PF: predicated region fallthrough
CT: control target
= control target key end

     0   :  { %7 = vsyncpa [#allocation3], 0  ;;  %s1490_s0 = inlined_call_operand.hbm [shape: f32[2,3,8,256], index: 0, kind: input, shape index: {}]   ;;  %s1491_s1 = inlined_call_operand.hbm [shape: s32[1,256], index: 1, kind: input, shape index: {}]   ;;  %s1492_s2 = inlined_call_operand.hbm [shape: f32[2,1,128], index: 2, kind: output, shape index: {}]  }
   0x1   :  { %9 = vsyncpa [#allocation3 + $0x1], 0 }
   0x2   :  { %10 = vsyncpa [#allocation6], 0 }
   0x3   :  { %11 = vsyncpa [#allocation4], 0 }
   0x4   :  { %13 = vsyncpa [#allocation4 + $0x1], 0  ;;  %s932_s9 = smov 0   ;;  %s934_s10 = smov 0  }
   0x5   :  { %s936_s11 = smov 0   ;;  %s938_s12 = smov 0  }
   0x6 LB: > { %s953_s13 = sadd.s32 4294967295, %s907_s12   ;;  %s679_s14 = sadd.s32 4294967294, %s907_s12   ;;  %s907_s12 = sphi %s938_s12, %s1511_s12   ;;  %s903_s11 = sphi %s936_s11, %s1510_s11   ;;  %s899_s10 = sphi %s934_s10, %s1509_s10   ;;  %s895_s9 = sphi %s932_s9, %s1508_s9  }
   0x7   : > { %s957_s15 = sadd.s32 1, %s907_s12   ;;  %s26_s16 = sadd.s32 1, %s903_s11 }
   0x8   : > { %s23_s17 = ssub.s32 %s907_s12, %s957_s15  ;;  %p33_p0 = scmp.ne.s32.totalorder %s903_s11, %s899_s10 }
   0x9   : > { %p24_p1 = scmp.eq.s32.totalorder %s23_s17, 0  ;;  %p34_p2 = scmp.eq.s32.totalorder %s907_s12, 0 }
   0xa   : > { %p39_p3 = scmp.ne.s32.totalorder %s899_s10, %s895_s9  ;;  %p40_p4 = scmp.eq.s32.totalorder %s953_s13, 0 }
   0xb   : > { %s969_s18 = scalar_select %p24_p1, %s903_s11, %s26_s16  }
   0xc   : > { %p971_p5 = por %p34_p2, %p33_p0  ;;  %p977_p6 = por %p40_p4, %p39_p3 }
   0xd   : > { %p84_p7 = scmp.eq.s32.totalorder %s953_s13, 1  ;;  %p90_p8 = scmp.eq.s32.totalorder %s679_s14, 1 }
   0xe   : > { %p680_p9 = scmp.ge.s32.totalorder %s907_s12, 1  ;;  %p97_p10 = scmp.lt.s32.totalorder %s907_s12, 3 }
   0xf   : > { %p984_p11 = por %p84_p7, %p33_p0  ;;  %p988_p12 = por %p90_p8, %p39_p3 }
  0x10   : > { %p992_p13 = pnand %p680_p9, %p97_p10  ;;  %s109_s26 = sshll.u32 %s1491_s1, 4  ;;  %s110_s26 = int_to_ptr.hbm [resolvable:$true] %s109_s26 }
  0x11   : > { %s909_s27 = smov [#allocation5]   ;;  %p720_p3 = scmp.lt.s32.totalorder %s907_s12, 2 }
  0x12   : > { %p707_p1 = pneg %p992_p13  ;;  %s111_s28 = sshll.u32 %s909_s27, 4  ;;  %s112_s28 = int_to_ptr.vmem [resolvable:$true] %s111_s28 }
  0x13   : > { %s122_s29 = sand.u32 1, %s903_s11   ;;  %p1008_p7 = pnand %p720_p3, %p971_p5 }
  0x14   : > { %p708_p2 = pnand %p707_p1, %p40_p4  ;;  %s692_s3 = smul.u32 48, %s122_s29 }
  0x15   : > { %s693_s4 = smul.u32 48, %s907_s12  ;;  %s123_s17 = scalar_lea.sflag [#allocation3], %s122_s29 }
  0x16   : > { %710 = dma.hbm_to_vmem [thread:$0]  (!%p708_p2), %s110_s26, 32, %s112_s28, [#allocation6]  }
  0x17   : > { %s131_s7 = scalar_lea.hbm %s1490_s0, %s693_s4  ;;  %s126_s8 = scalar_lea.vmem [#allocation2], %s692_s3 }
  0x18   : > { %s134_s14 = sshll.u32 %s126_s8, 4  ;;  %s132_s16 = sshll.u32 %s131_s7, 4  ;;  %s135_s14 = int_to_ptr.vmem [resolvable:$true] %s134_s14  ;;  %s133_s16 = int_to_ptr.hbm [resolvable:$true] %s132_s16 }
  0x19   : > { %s807_s24 = sshra.s32 %s133_s16, 4  ;;  %p811_p8 = pneg %p1008_p7  ;;  %s808_s24 = int_to_ptr.hbm [resolvable:$true] %s807_s24 }
  0x1a   : > { %s809_s19 = scalar_lea.hbm %s808_s24, 48  ;;  %s814_s27 = scalar_lea.hbm %s1490_s0, 96 }
  0x1b   : > { %p810_p5 = scmp.ne.s32.totalorder %s808_s24, %s809_s19  ;;  %p815_p1 = scmp.lt.s32.totalorder %s808_s24, %s1490_s0 }
  0x1c   : > { %p816_p2 = scmp.lt.s32.totalorder %s814_s27, %s809_s19 }
  0x1d   : > { %p812_p9 = pnand %p811_p8, %p810_p5 }
  0x1e   : > { %p817_p3 = por %p816_p2, %p815_p1 }
  0x1f   : > { %p813_p10 = pneg %p812_p9 }
  0x21   : > { %p818_p0 = pnand %p817_p3, %p813_p10 }
  0x23   : > { %821 = shalt.err (!%p818_p0)
}
  0x24   : > { %s910_s29 = smov 256   ;;  %s911_s3 = smov 16  }
  0x25   : > { %714 = dma.hbm_to_vmem [thread:$0]  (!%p1008_p7), %s133_s16, 768, %s135_s14, %s123_s17, %s910_s29, %s910_s29, %s911_s3  }
  0x26   : > { %146 = sbr.rel (%p992_p13) target bundleno = 459 (0x1cb), region = 28  ;;  %s1029_s5 = sand.u32 (!%p992_p13), 1, %s899_s10  }
  0x27   : > { %s694_s6 = smul.u32 (!%p992_p13), 48, %s1029_s5  ;;  %s149_s7 = scalar_lea.sflag (!%p992_p13), [#allocation3], %s1029_s5 }
  0x29   : > { %s1033_s8 = scalar_lea.vmem (!%p992_p13), [#allocation2], %s694_s6 }
  0x2b   : > { %882 = dma.done.wait (%p977_p6), %s149_s7, 768  }
  0x2c   : > { %884 = vsyncadd (%p977_p6), %s149_s7, 4294966528 }
  0x2d   : > { %886 = dma.done.wait (%p40_p4), [#allocation6], 32  }
  0x2e   : > { %888 = vsyncadd (%p40_p4), [#allocation6], 4294967264  ;;  %v1044_v0 = vld [vmem:[%s1033_s8] sm:$0xff]  ;;  %s912_s23 = smov 16   ;;  %s913_s30 = smov 112   ;;  %v1050_v1 = vld [vmem:[%s1033_s8 + $0x8] sm:$0xff]  ;;  %v178_v13 = vlaneseq }
  0x2f   : > { %219 = vrot.lane.b32.xlu1 %v1044_v0, %s912_s23  ;;  %212 = vrot.lane.b32.xlu0 %v1044_v0, %s913_s30  ;;  %s914_s20 = smov 127   ;;  %s915_s14 = smov 1   ;;  %v1058_v2 = vld [vmem:[%s1033_s8 + $0x10] sm:$0xff]  ;;  %v1062_v3 = vld [vmem:[%s1033_s8 + $0x18] sm:$0xff]  ;;  %v225_v19 = vrot.slane %v1044_v0, 1  ;;  %v227_v20 = vrot.slane %v1044_v0, 7 }
  0x30   : > { %198 = vrot.lane.b32.xlu2 %v1044_v0, %s914_s20  ;;  %v1071_v4 = vld [vmem:[%s1033_s8 + $0x20] sm:$0xff]  ;;  %v1076_v5 = vld [vmem:[%s1033_s8 + $0x28] sm:$0xff]  ;;  %v304_v15 = vrot.slane %v1058_v2, 1  ;;  %v305_v16 = vrot.slane %v1062_v3, 1  ;;  %v306_v17 = vrot.slane %v1058_v2, 7  ;;  %v307_v18 = vrot.slane %v1062_v3, 7  ;;  %s599_s24 = scalar_lea.hbm %s1492_s2, %s953_s13 }
  0x31   : > { %v1095_v23 = vand.u32 127, %v178_v13  ;;  %v1097_v26 = vshrl.u32 %v178_v13, 7  ;;  %v233_v27 = vsub.f32 %v225_v19, %v227_v20  ;;  %v226_v28 = vrot.slane %v1050_v1, 1  ;;  %v183_v48 = vld [vmem:[#allocation5] sm:$0x3]  ;;  %s177_s25 = scalar_lea.vmem [#allocation7], %s1029_s5 }
  0x32   : > { %v312_v24 = vsub.f32 %v304_v15, %v306_v17  ;;  %v313_v25 = vsub.f32 %v305_v16, %v307_v18  ;;  %v228_v29 = vrot.slane %v1050_v1, 7  ;;  %v310_v30 = vsub.f32 %v1058_v2, %v306_v17  ;;  %s601_s26 = sshll.u32 %s177_s25, 4  ;;  %s603_s28 = sshll.u32 %s599_s24, 4  ;;  %s602_s26 = int_to_ptr.vmem [resolvable:$true] %s601_s26  ;;  %s604_s28 = int_to_ptr.hbm [resolvable:$true] %s603_s28 }
  0x33   : > { %vm190_vm0 = vcmp.lt.s32.totalorder %v1095_v23, 16  ;;  %vm216_vm1 = vcmp.lt.s32.totalorder %v1095_v23, 112  ;;  %v311_v31 = vsub.f32 %v1062_v3, %v307_v18  ;;  %vm209_vm2 = vcmp.lt.s32.totalorder %v1095_v23, 1  ;;  %s591_s13 = scalar_lea.sflag [#allocation4], %s1029_s5  ;;  %s851_s4 = sshra.s32 %s604_s28, 4  ;;  %s852_s4 = int_to_ptr.hbm [resolvable:$true] %s851_s4 }
  0x34   : > { %v314_v32 = vmul.f32 0.5, %v312_v24  ;;  %v315_v33 = vmul.f32 0.5, %v313_v25  ;;  %vm195_vm3 = vcmp.eq.s32.totalorder %v1097_v26, 7  ;;  %v231_v34 = vsub.f32 %v1044_v0, %v227_v20  ;;  %s853_s29 = scalar_lea.hbm %s852_s4, 1  ;;  %s857_s7 = scalar_lea.hbm %s1492_s2, 2 }
  0x35   : > { %v235_v35 = vmul.f32 0.5, %v233_v27  ;;  %v234_v37 = vsub.f32 %v226_v28, %v228_v29  ;;  %vm202_vm4 = vcmp.lt.s32.totalorder %v1095_v23, 127  ;;  %v1112_v38 = vadd.s32 128, %v1095_v23  ;;  %p854_p4 = scmp.ne.s32.totalorder %s852_s4, %s853_s29  ;;  %p858_p0 = scmp.lt.s32.totalorder %s852_s4, %s1492_s2 }
  0x36   : > { %v308_v39 = vsub.f32 %v304_v15, %v1058_v2  ;;  %v309_v40 = vsub.f32 %v305_v16, %v1062_v3  ;;  %vm194_vm5 = vcmp.eq.s32.totalorder %v1097_v26, 0  ;;  %v316_v46 = vsel %vm195_vm3, %v310_v30, %v314_v32  ;;  %p859_p7 = scmp.lt.s32.totalorder %s857_s7, %s853_s29 }
  0x37   : > { %221 = vrot.lane.b32.xlu1 %v1050_v1, %s912_s23  ;;  %214 = vrot.lane.b32.xlu0 %v1050_v1, %s913_s30  ;;  %v317_v47 = vsel %vm195_vm3, %v311_v31, %v315_v33  ;;  %v229_v49 = vsub.f32 %v225_v19, %v1044_v0  ;;  %v232_v50 = vsub.f32 %v1050_v1, %v228_v29  ;;  %v236_v54 = vmul.f32 0.5, %v234_v37  ;;  %p855_p6 = pnand %p854_p4, %p984_p11 }
  0x38   : > { %200 = vrot.lane.b32.xlu2 %v1050_v1, %s914_s20  ;;  %v237_v53 = vsel %vm195_vm3, %v231_v34, %v235_v35  ;;  %v185_v59 = vperm.slane %v183_v48, 1  ;;  %vm193_vm6 = vcmp.ge.s32.totalorder %v1112_v38, 240  ;;  %v1146_v61 = vsel %vm194_vm5, %v308_v39, %v316_v46  ;;  %p860_p5 = por %p859_p7, %p858_p0 }
  0x39   : > { %v1150_v62 = vsel %vm194_vm5, %v309_v40, %v317_v47  ;;  %v238_v16 = vsel %vm195_vm3, %v232_v50, %v236_v54  ;;  %v184_v18 = vperm.slane %v183_v48, 0  ;;  %v383_v20 = vrot.slane %v1071_v4, 1  ;;  %p856_p13 = pneg %p855_p6 }
  0x3a   : > { %vm1163_vm7 = vcmp.eq.s32.totalorder %v185_v59, 15  ;;  %v384_v25 = vrot.slane %v1076_v5, 1  ;;  %v385_v27 = vrot.slane %v1071_v4, 7  ;;  %vm1172_vm8 = vcmp.eq.s32.totalorder %v185_v59, 0 }
  0x3b   : > { %v386_v31 = vrot.slane %v1076_v5, 7  ;;  %vm1200_vm9 = vcmp.eq.s32.totalorder %v184_v18, 15  ;;  %vm1217_vm10 = vcmp.eq.s32.totalorder %v184_v18, 0  ;;  %p861_p8 = pnand %p860_p5, %p856_p13 }
  0x3c   : > { %v389_v59 = vsub.f32 %v1071_v4, %v385_v27 }
  0x3f   : > { %207 = vrot.lane.b32.xlu1 %v1050_v1, %s915_s14  ;;  %205 = vrot.lane.b32.xlu0 %v1044_v0, %s915_s14 }
  0x40   : > { %292 = vrot.lane.b32.xlu2 %v1058_v2, %s913_s30 }
  0x47   : > { %298 = vrot.lane.b32.xlu1 %v1058_v2, %s912_s23  ;;  %294 = vrot.lane.b32.xlu0 %v1062_v3, %s913_s30 }
  0x48   : > { %300 = vrot.lane.b32.xlu2 %v1062_v3, %s912_s23 }
  0x4f   : > { %282 = vrot.lane.b32.xlu1 %v1062_v3, %s914_s20  ;;  %280 = vrot.lane.b32.xlu0 %v1058_v2, %s914_s20 }
  0x50   : > { %286 = vrot.lane.b32.xlu2 %v1058_v2, %s915_s14 }
  0x57   : > { %371 = vrot.lane.b32.xlu1 %v1071_v4, %s913_s30  ;;  %288 = vrot.lane.b32.xlu0 %v1062_v3, %s915_s14 }
  0x58   : > { %373 = vrot.lane.b32.xlu2 %v1076_v5, %s913_s30 }
  0x5f   : > { %379 = vrot.lane.b32.xlu1 %v1076_v5, %s912_s23  ;;  %377 = vrot.lane.b32.xlu0 %v1071_v4, %s912_s23 }
  0x60   : > { %359 = vrot.lane.b32.xlu2 %v1071_v4, %s914_s20 }
  0x67   : > { %365 = vrot.lane.b32.xlu1 %v1071_v4, %s915_s14  ;;  %361 = vrot.lane.b32.xlu0 %v1076_v5, %s914_s20 }
  0x68   : > { %367 = vrot.lane.b32.xlu2 %v1076_v5, %s915_s14 }
  0x8a   : > { %v199_v6 = vpop.permute.xlu2 %198 }
  0x92   : > { %v201_v7 = vpop.permute.xlu2 %200 }
  0x93   : > { %v1131_v51 = vsel %vm202_vm4, %v199_v6, %v201_v7  ;;  %v204_v52 = vsel %vm202_vm4, %v201_v7, %v199_v6  ;;  %v1156_v7 = vsel %vm194_vm5, %v229_v49, %v237_v53 }
  0x94   : > { %v253_v63 = vsub.f32 %v1131_v51, %v1044_v0  ;;  %v254_v17 = vsub.f32 %v204_v52, %v1050_v1 }
  0x9a   : > { %v1085_v10 = vpop.permute.xlu2 %292 }
  0xa1   : > { %v220_v8 = vpop.permute.xlu1 %219  ;;  %v213_v9 = vpop.permute.xlu0 %212 }
  0xa2   : > { %v1087_v14 = vpop.permute.xlu2 %300 }
  0xa9   : > { %v222_v11 = vpop.permute.xlu1 %221  ;;  %v215_v12 = vpop.permute.xlu0 %214 }
  0xaa   : > { %v1108_v36 = vpop.permute.xlu2 %286  ;;  %v223_v43 = vsel %vm190_vm0, %v220_v8, %v222_v11  ;;  %v218_v44 = vsel %vm216_vm1, %v215_v12, %v213_v9  ;;  %v224_v55 = vsel %vm190_vm0, %v222_v11, %v220_v8  ;;  %v217_v56 = vsel %vm216_vm1, %v213_v9, %v215_v12 }
  0xab   : > { %v246_v57 = vsub.f32 %v218_v44, %v223_v43  ;;  %v245_v6 = vsub.f32 %v217_v56, %v224_v55  ;;  %v230_v8 = vsub.f32 %v226_v28, %v1050_v1  ;;  %v241_v32 = vsub.f32 %v217_v56, %v1044_v0 }
  0xac   : > { %v1206_v44 = vmul.f32 %v1156_v7, %v1156_v7 }
  0xad   : > { %v248_v9 = vmul.f32 0.5, %v246_v57  ;;  %v247_v28 = vmul.f32 0.5, %v245_v6  ;;  %v1178_v30 = vsel %vm194_vm5, %v230_v8, %v238_v16  ;;  %v387_v8 = vsub.f32 %v383_v20, %v1071_v4 }
  0xb1   : > { %v208_v21 = vpop.permute.xlu1 %207  ;;  %v206_v22 = vpop.permute.xlu0 %205 }
  0xb2   : > { %v210_v45 = vsel %vm209_vm2, %v206_v22, %v208_v21  ;;  %v211_v60 = vsel %vm209_vm2, %v208_v21, %v206_v22  ;;  %v244_v21 = vsub.f32 %v1050_v1, %v223_v43  ;;  %v374_v24 = vpop.permute.xlu2 %373 }
  0xb3   : > { %v258_v58 = vsub.f32 %v204_v52, %v210_v45  ;;  %v257_v11 = vsub.f32 %v1131_v51, %v211_v60  ;;  %v256_v22 = vsub.f32 %v1050_v1, %v210_v45  ;;  %v1210_v45 = vmul.f32 %v1178_v30, %v1178_v30 }
  0xb4   : > { %v1184_v1 = vsel %vm193_vm6, %v244_v21, %v248_v9  ;;  %v255_v46 = vsub.f32 %v1044_v0, %v211_v60  ;;  %v390_v9 = vsub.f32 %v1076_v5, %v386_v31 }
  0xb5   : > { %v260_v12 = vmul.f32 0.5, %v258_v58  ;;  %v259_v33 = vmul.f32 0.5, %v257_v11  ;;  %v270_v47 = vmul.f32 %v1184_v1, %v1184_v1 }
  0xb7   : > { %v262_v34 = vsel %vm1163_vm7, %v256_v22, %v260_v12  ;;  %v261_v0 = vsel %vm1200_vm9, %v255_v46, %v259_v33  ;;  %v272_v18 = vadd.f32 %v270_v47, %v1210_v45 }
  0xb8   : > { %v1227_v52 = vsel %vm1172_vm8, %v254_v17, %v262_v34  ;;  %v1250_v16 = vsel %vm1217_vm10, %v253_v63, %v261_v0 }
  0xb9   : > { %v299_v41 = vpop.permute.xlu1 %298  ;;  %v295_v42 = vpop.permute.xlu0 %294  ;;  %v274_v6 = vmul.f32 %v1227_v52, %v1227_v52  ;;  %v273_v33 = vmul.f32 %v1250_v16, %v1250_v16 }
  0xba   : > { %v302_v35 = vsel %vm190_vm0, %v299_v41, %v1087_v14  ;;  %v303_v37 = vsel %vm190_vm0, %v1087_v14, %v299_v41  ;;  %v296_v39 = vsel %vm216_vm1, %v1085_v10, %v295_v42  ;;  %v297_v40 = vsel %vm216_vm1, %v295_v42, %v1085_v10 }
  0xbb   : > { %v391_v14 = vsub.f32 %v383_v20, %v385_v27  ;;  %v1214_v41 = vsel %vm190_vm0, %v241_v32, %v247_v28  ;;  %v392_v42 = vsub.f32 %v384_v25, %v386_v31  ;;  %v324_v48 = vsub.f32 %v296_v39, %v303_v37 }
  0xbc   : > { %v325_v49 = vsub.f32 %v297_v40, %v302_v35  ;;  %v269_v56 = vmul.f32 %v1214_v41, %v1214_v41  ;;  %v323_v22 = vsub.f32 %v1062_v3, %v302_v35  ;;  %v320_v20 = vsub.f32 %v296_v39, %v1058_v2 }
  0xbd   : > { %v326_v11 = vmul.f32 0.5, %v324_v48  ;;  %v393_v17 = vmul.f32 0.5, %v391_v14  ;;  %v394_v21 = vmul.f32 0.5, %v392_v42  ;;  %v345_v28 = vmul.f32 %v1150_v62, %v1150_v62 }
  0xbe   : > { %v327_v12 = vmul.f32 0.5, %v325_v49  ;;  %v271_v27 = vadd.f32 %v269_v56, %v1206_v44  ;;  %v276_v32 = vadd.f32 %v274_v6, %v272_v18 }
  0xbf   : > { %v1268_v35 = vsel %vm190_vm0, %v320_v20, %v326_v11 }
  0xc0   : > { %v1264_v34 = vsel %vm193_vm6, %v323_v22, %v327_v12  ;;  %v275_v56 = vadd.f32 %v273_v33, %v271_v27  ;;  %v347_v6 = vadd.f32 %v345_v28, %v276_v32 }
  0xc1   : > { %v283_v13 = vpop.permute.xlu1 %282  ;;  %v281_v15 = vpop.permute.xlu0 %280 }
  0xc2   : > { %v284_v53 = vsel %vm202_vm4, %v281_v15, %v283_v13  ;;  %v285_v57 = vsel %vm202_vm4, %v283_v13, %v281_v15 }
  0xc3   : > { %v332_v49 = vsub.f32 %v284_v53, %v1058_v2 }
  0xc9   : > { %v372_v50 = vpop.permute.xlu1 %371  ;;  %v289_v51 = vpop.permute.xlu0 %288 }
  0xca   : > { %v290_v54 = vsel %vm209_vm2, %v1108_v36, %v289_v51  ;;  %v291_v55 = vsel %vm209_vm2, %v289_v51, %v1108_v36  ;;  %v360_v36 = vpop.permute.xlu2 %359  ;;  %v375_v37 = vsel %vm216_vm1, %v372_v50, %v374_v24  ;;  %v376_v39 = vsel %vm216_vm1, %v374_v24, %v372_v50 }
  0xcb   : > { %v336_v58 = vsub.f32 %v284_v53, %v291_v55  ;;  %v337_v60 = vsub.f32 %v285_v57, %v290_v54  ;;  %v334_v31 = vsub.f32 %v1058_v2, %v291_v55  ;;  %v335_v63 = vsub.f32 %v1062_v3, %v290_v54 }
  0xcc   : > { %v333_v51 = vsub.f32 %v285_v57, %v1062_v3  ;;  %v344_v50 = vmul.f32 %v1146_v61, %v1146_v61  ;;  %v388_v54 = vsub.f32 %v384_v25, %v1076_v5  ;;  %v395_v55 = vsel %vm195_vm3, %v389_v59, %v393_v17 }
  0xcd   : > { %v338_v13 = vmul.f32 0.5, %v336_v58  ;;  %v339_v15 = vmul.f32 0.5, %v337_v60  ;;  %v1293_v58 = vmul.f32 %v1264_v34, %v1264_v34  ;;  %v396_v53 = vsel %vm195_vm3, %v390_v9, %v394_v21 }
  0xce   : > { %v1307_v25 = vmul.f32 %v1268_v35, %v1268_v35  ;;  %v1311_v11 = vsel %vm194_vm5, %v387_v8, %v395_v55  ;;  %v1319_v9 = vsel %vm194_vm5, %v388_v54, %v396_v53  ;;  %vm585_vm1 = vcmp.eq.s32.totalorder %v1095_v23, 1 }
  0xcf   : > { %v340_v46 = vsel %vm1200_vm9, %v334_v31, %v338_v13  ;;  %v341_v42 = vsel %vm1163_vm7, %v335_v63, %v339_v15  ;;  %v346_v13 = vadd.f32 %v344_v50, %v275_v56  ;;  %v399_v15 = vsub.f32 %v375_v37, %v1071_v4 }
  0xd0   : > { %v1297_v2 = vsel %vm1217_vm10, %v332_v49, %v340_v46  ;;  %v1301_v3 = vsel %vm1172_vm8, %v333_v51, %v341_v42  ;;  %v351_v8 = vadd.f32 %v1293_v58, %v347_v6  ;;  %v423_v27 = vmul.f32 %v1311_v11, %v1311_v11 }
  0xd1   : > { %v380_v40 = vpop.permute.xlu1 %379  ;;  %v378_v14 = vpop.permute.xlu0 %377  ;;  %v352_v12 = vmul.f32 %v1297_v2, %v1297_v2  ;;  %v353_v17 = vmul.f32 %v1301_v3, %v1301_v3  ;;  %v350_v28 = vadd.f32 %v1307_v25, %v346_v13  ;;  %v559_v42 = vmul.f32 %v1319_v9, %v1264_v34 }
  0xd2   : > { %v381_v47 = vsel %vm190_vm0, %v378_v14, %v380_v40  ;;  %v382_v48 = vsel %vm190_vm0, %v380_v40, %v378_v14  ;;  %v368_v60 = vpop.permute.xlu2 %367  ;;  %v558_v40 = vmul.f32 %v1311_v11, %v1268_v35  ;;  %v548_v49 = vmul.f32 %v1311_v11, %v1297_v2 }
  0xd3   : > { %v403_v0 = vsub.f32 %v375_v37, %v382_v48  ;;  %v404_v24 = vsub.f32 %v376_v39, %v381_v47  ;;  %v402_v18 = vsub.f32 %v1076_v5, %v381_v47  ;;  %v355_v37 = vadd.f32 %v353_v17, %v351_v8 }
  0xd4   : > { %v424_v39 = vmul.f32 %v1319_v9, %v1319_v9  ;;  %v354_v38 = vadd.f32 %v352_v12, %v350_v28  ;;  %v916_v47 = vmov 0.1   ;;  %v549_v51 = vmul.f32 %v1319_v9, %v1301_v3 }
  0xd5   : > { %v405_v57 = vmul.f32 0.5, %v403_v0  ;;  %v406_v59 = vmul.f32 0.5, %v404_v24  ;;  %763 = vrcp.f32 %v916_v47 }
  0xd6   : > { %v426_v53 = vadd.f32 %v424_v39, %v355_v37 }
  0xd7   : > { %v1333_v31 = vsel %vm193_vm6, %v402_v18, %v406_v59  ;;  %v1337_v63 = vsel %vm190_vm0, %v399_v15, %v405_v57  ;;  %v425_v57 = vadd.f32 %v423_v27, %v354_v38  ;;  %vm582_vm0 = vcmp.eq.s32.totalorder %v1095_v23, 0 }
  0xd8   : > { %v427_v48 = vmul.f32 %v1337_v63, %v1337_v63  ;;  %v556_v6 = vmul.f32 %v1337_v63, %v1146_v61  ;;  %v557_v12 = vmul.f32 %v1333_v31, %v1150_v62  ;;  %v540_v17 = vmul.f32 %v1337_v63, %v1297_v2 }
  0xd9   : > { %v366_v21 = vpop.permute.xlu1 %365  ;;  %v362_v22 = vpop.permute.xlu0 %361 }
  0xda   : > { %v369_v20 = vsel %vm209_vm2, %v366_v21, %v368_v60  ;;  %v370_v26 = vsel %vm209_vm2, %v368_v60, %v366_v21  ;;  %v363_v32 = vsel %vm202_vm4, %v360_v36, %v362_v22  ;;  %v364_v33 = vsel %vm202_vm4, %v362_v22, %v360_v36 }
  0xdb   : > { %v415_v14 = vsub.f32 %v363_v32, %v370_v26  ;;  %v416_v46 = vsub.f32 %v364_v33, %v369_v20  ;;  %v428_v36 = vmul.f32 %v1333_v31, %v1333_v31  ;;  %v413_v0 = vsub.f32 %v1071_v4, %v370_v26  ;;  %v1381_v43 = vpop.eup %763 }
  0xdc   : > { %v414_v24 = vsub.f32 %v1076_v5, %v369_v20  ;;  %v411_v55 = vsub.f32 %v363_v32, %v1071_v4  ;;  %v412_v56 = vsub.f32 %v364_v33, %v1076_v5  ;;  %v541_v4 = vmul.f32 %v1333_v31, %v1301_v3 }
  0xdd   : > { %v417_v50 = vmul.f32 0.5, %v415_v14  ;;  %v418_v54 = vmul.f32 0.5, %v416_v46  ;;  %v430_v18 = vadd.f32 %v428_v36, %v426_v53  ;;  %v429_v21 = vadd.f32 %v427_v48, %v425_v57 }
  0xde   : > { %v560_v20 = vsub.f32 %v556_v6, %v558_v40  ;;  %v561_v26 = vsub.f32 %v557_v12, %v559_v42  ;;  %v484_v53 = vadd.f32 %v1337_v63, %v1297_v2  ;;  %vm466_vm11 = vweird.f32 %v1381_v43 }
  0xdf   : > { %v419_v59 = vsel %vm1200_vm9, %v413_v0, %v417_v50  ;;  %v420_v60 = vsel %vm1163_vm7, %v414_v24, %v418_v54  ;;  %v462_v0 = vmul.f32 0.1, %v1381_v43 }
  0xe0   : > { %v1375_v5 = vsel %vm1217_vm10, %v411_v55, %v419_v59  ;;  %v1379_v19 = vsel %vm1172_vm8, %v412_v56, %v420_v60  ;;  %v562_v48 = vmul.f32 %v560_v20, %v1250_v16  ;;  %v563_v36 = vmul.f32 %v561_v26, %v1227_v52 }
  0xe1   : > { %v1385_v13 = vmul.f32 %v1375_v5, %v1375_v5  ;;  %v1389_v15 = vmul.f32 %v1379_v19, %v1379_v19  ;;  %v538_v10 = vmul.f32 %v1375_v5, %v1268_v35  ;;  %v539_v29 = vmul.f32 %v1379_v19, %v1264_v34 }
  0xe2   : > { %v546_v22 = vmul.f32 %v1375_v5, %v1146_v61  ;;  %v547_v8 = vmul.f32 %v1379_v19, %v1150_v62  ;;  %v476_v55 = vadd.f32 %v1146_v61, %v1214_v41  ;;  %v477_v56 = vadd.f32 %v1150_v62, %v1184_v1 }
  0xe3   : > { %v1400_v27 = vadd.f32 %v1389_v15, %v430_v18  ;;  %v1403_v28 = vadd.f32 %v1385_v13, %v429_v21  ;;  %v542_v32 = vsub.f32 %v538_v10, %v540_v17  ;;  %v543_v33 = vsub.f32 %v539_v29, %v541_v4 }
  0xe4   : > { %v550_v37 = vsub.f32 %v546_v22, %v548_v49  ;;  %v551_v39 = vsub.f32 %v547_v8, %v549_v51  ;;  %v481_v49 = vadd.f32 %v1319_v9, %v1227_v52  ;;  %v480_v51 = vadd.f32 %v1311_v11, %v1250_v16 }
  0xe5   : > { %765 = vrsqrt.f32 %v1403_v28  ;;  %v544_v38 = vmul.f32 %v542_v32, %v1156_v7  ;;  %v545_v14 = vmul.f32 %v543_v33, %v1178_v30  ;;  %v463_v60 = vsub.f32 1.0, %v462_v0 }
  0xe6   : > { %v552_v46 = vmul.f32 %v550_v37, %v1214_v41  ;;  %v553_v47 = vmul.f32 %v551_v39, %v1184_v1  ;;  %767 = vrsqrt.f32 %v1400_v27  ;;  %v483_v16 = vmul.f32 0.5, %v481_v49 }
  0xe7   : > { %v482_v11 = vmul.f32 0.5, %v480_v51  ;;  %v478_v61 = vmul.f32 0.5, %v476_v55  ;;  %v479_v41 = vmul.f32 0.5, %v477_v56  ;;  %v485_v62 = vadd.f32 %v1333_v31, %v1301_v3 }
  0xe8   : > { %v554_v40 = vsub.f32 %v544_v38, %v552_v46  ;;  %v555_v42 = vsub.f32 %v545_v14, %v553_v47  ;;  %v486_v1 = vmul.f32 0.5, %v484_v53  ;;  %v464_v29 = vmul.f32 %v1381_v43, %v463_v60 }
  0xe9   : > { %v502_v10 = vmul.f32 %v482_v11, %v482_v11  ;;  %v503_v22 = vmul.f32 %v483_v16, %v483_v16  ;;  %v500_v32 = vmul.f32 %v478_v61, %v478_v61  ;;  %v487_v33 = vmul.f32 0.5, %v485_v62 }
  0xea   : > { %v564_v24 = vadd.f32 %v562_v48, %v554_v40  ;;  %v565_v50 = vadd.f32 %v563_v36, %v555_v42  ;;  %v501_v37 = vmul.f32 %v479_v41, %v479_v41  ;;  %v506_v39 = vmul.f32 %v486_v1, %v486_v1 }
  0xeb   : > { %v766_v54 = vpop.eup %765  ;;  %v465_v3 = vadd.f32 %v1381_v43, %v464_v29  ;;  %v504_v31 = vadd.f32 %v502_v10, %v500_v32  ;;  %v496_v42 = vadd.f32 %v1307_v25, %v1206_v44  ;;  %v507_v48 = vmul.f32 %v487_v33, %v487_v33 }
  0xec   : > { %v566_v57 = vsub.f32 0.0, %v564_v24  ;;  %v567_v59 = vsub.f32 0.0, %v565_v50  ;;  %v436_v52 = vmul.f32 %v766_v54, %v1403_v28  ;;  %v768_v9 = vpop.eup %767  ;;  %v505_v40 = vadd.f32 %v503_v22, %v501_v37 }
  0xed   : > { %v448_v4 = vmul.f32 %v768_v9, %v1400_v27  ;;  %vm442_vm12 = vcmp.eq.f32.partialorder %v1403_v28, inf  ;;  %v445_v36 = vand.u32 2147483648, %v1403_v28  ;;  %vm444_vm13 = vcmp.eq.f32.partialorder %v1403_v28, 0.0 }
  0xee   : > { %v568_v6 = vmax.f32 %v566_v57, 0.0  ;;  %v569_v12 = vmax.f32 %v567_v59, 0.0  ;;  %v437_v17 = vmul.f32 %v766_v54, %v436_v52  ;;  %v508_v0 = vadd.f32 %v506_v39, %v504_v31 }
  0xef   : > { %v449_v21 = vmul.f32 %v768_v9, %v448_v4  ;;  %vm454_vm14 = vcmp.eq.f32.partialorder %v1400_v27, inf  ;;  %v457_v50 = vand.u32 2147483648, %v1400_v27  ;;  %v488_v44 = vadd.f32 %v1268_v35, %v1156_v7 }
  0xf0   : > { %v570_v2 = vmul.f32 %v568_v6, %v568_v6  ;;  %v571_v63 = vmul.f32 %v569_v12, %v569_v12  ;;  %v438_v18 = vmul.f32 0.5, %v437_v17  ;;  %vm456_vm15 = vcmp.eq.f32.partialorder %v1400_v27, 0.0 }
  0xf1   : > { %v450_v26 = vmul.f32 0.5, %v449_v21  ;;  %v498_v53 = vadd.f32 %v496_v42, %v1385_v13  ;;  %v509_v57 = vadd.f32 %v507_v48, %v505_v40  ;;  %v490_v7 = vadd.f32 %v488_v44, %v1375_v5 }
  0xf2   : > { %v572_v8 = vadd.f32 %v571_v63, %v570_v2  ;;  %v439_v20 = vsub.f32 1.5, %v438_v18  ;;  %v510_v16 = vmul.f32 2.0, %v508_v0 }
  0xf3   : > { %v451_v14 = vsub.f32 1.5, %v450_v26  ;;  %v492_v12 = vmul.f32 0.5, %v490_v7 }
  0xf4   : > { %573 = vadd.xlane.f32.xlu1 %v572_v8  ;;  %v440_v38 = vmul.f32 %v766_v54, %v439_v20  ;;  %v467_v54 = vsel %vm466_vm11, %v1381_v43, %v465_v3  ;;  %v489_v43 = vadd.f32 %v1264_v34, %v1178_v30 }
  0xf5   : > { %v452_v47 = vmul.f32 %v768_v9, %v451_v14  ;;  %v494_v4 = vmul.f32 %v492_v12, %v490_v7 }
  0xf6   : > { %v441_v46 = vmul.f32 %v440_v38, %v1403_v28  ;;  %v491_v6 = vadd.f32 %v489_v43, %v1379_v19 }
  0xf7   : > { %v453_v51 = vmul.f32 %v452_v47, %v1400_v27 }
  0xf8   : > { %v443_v49 = vsel %vm442_vm12, %v1403_v28, %v441_v46  ;;  %v497_v28 = vadd.f32 %v1293_v58, %v1210_v45  ;;  %v511_v45 = vmul.f32 2.0, %v509_v57  ;;  %v512_v58 = vadd.f32 %v510_v16, %v498_v53 }
  0xf9   : > { %v446_v24 = vsel %vm444_vm13, %v445_v36, %v443_v49  ;;  %v455_v25 = vsel %vm454_vm14, %v1400_v27, %v453_v51  ;;  %v493_v30 = vmul.f32 0.5, %v491_v6 }
  0xfa   : > { %v459_v55 = vsub.f32 0.0, %v446_v24  ;;  %v458_v56 = vsel %vm456_vm15, %v457_v50, %v455_v25  ;;  %v499_v35 = vadd.f32 %v497_v28, %v1389_v15  ;;  %v514_v34 = vmul.f32 0.5, %v512_v58 }
  0xfb   : > { %v460_v59 = vsub.f32 0.0, %v458_v56  ;;  %v495_v1 = vmul.f32 %v493_v30, %v491_v6 }
  0xfc   : > { %v468_v52 = vmul.f32 %v467_v54, %v459_v55  ;;  %v520_v9 = vmul.f32 1.442695, %v459_v55  ;;  %v513_v17 = vadd.f32 %v511_v45, %v499_v35  ;;  %v516_v2 = vadd.f32 %v514_v34, %v494_v4 }
  0xfd   : > { %v469_v27 = vmul.f32 %v467_v54, %v460_v59  ;;  %v522_v60 = vmul.f32 1.442695, %v460_v59 }
  0xfe   : > { %v470_v11 = vmul.f32 1.442695, %v468_v52  ;;  %769 = vpow2.f32 %v520_v9  ;;  %v515_v15 = vmul.f32 0.5, %v513_v17 }
  0xff   : > { %v472_v13 = vmul.f32 1.442695, %v469_v27 }
 0x100   : > { %771 = vpow2.f32 %v470_v11  ;;  %v517_v18 = vadd.f32 %v515_v15, %v495_v1 }
 0x101   : > { %773 = vpow2.f32 %v522_v60 }
 0x102   : > { %775 = vpow2.f32 %v472_v13 }
 0x104   : > { %v770_v5 = vpop.eup %769 }
 0x105   : > { %v524_v10 = vadd.f32 1.0, %v770_v5 }
 0x106   : > { %v772_v61 = vpop.eup %771 }
 0x107   : > { %v774_v41 = vpop.eup %773  ;;  %v474_v62 = vadd.f32 1.0, %v772_v61 }
 0x108   : > { %v776_v19 = vpop.eup %775  ;;  %v525_v22 = vadd.f32 1.0, %v774_v41 }
 0x109   : > { %v475_v63 = vadd.f32 1.0, %v776_v19  ;;  %v518_v21 = vmul.f32 %v516_v2, %v474_v62 }
 0x10b   : > { %v519_v29 = vmul.f32 %v517_v18, %v475_v63  ;;  %v526_v8 = vmul.f32 %v524_v10, %v518_v21 }
 0x10d   : > { %v527_v20 = vmul.f32 %v525_v22, %v519_v29 }
 0x10f   : > { %v528_v26 = vadd.f32 %v527_v20, %v526_v8 }
 0x111   : > { %529 = vadd.xlane.f32.xlu0 %v528_v26 }
 0x167   : > { %v574_v32 = vpop.xlane.xlu1 %573 }
 0x168   : > { %v575_v33 = vrot.slane %v574_v32, 4 }
 0x16a   : > { %v576_v37 = vadd.f32 %v575_v33, %v574_v32 }
 0x16c   : > { %v577_v39 = vrot.slane %v576_v37, 2 }
 0x16e   : > { %v578_v31 = vadd.f32 %v577_v39, %v576_v37 }
 0x170   : > { %v579_v40 = vrot.slane %v578_v31, 1 }
 0x172   : > { %v580_v36 = vadd.f32 %v579_v40, %v578_v31 }
 0x184   : > { %v530_v38 = vpop.xlane.xlu0 %529 }
 0x185   : > { %v531_v14 = vrot.slane %v530_v38, 4 }
 0x187   : > { %v532_v3 = vadd.f32 %v531_v14, %v530_v38 }
 0x189   : > { %v533_v46 = vrot.slane %v532_v3, 2 }
 0x18b   : > { %v534_v47 = vadd.f32 %v533_v46, %v532_v3 }
 0x18d   : > { %v535_v42 = vrot.slane %v534_v47, 1 }
 0x18f   : > { %v536_v48 = vadd.f32 %v535_v42, %v534_v47 }
 0x191   : > { %695 = vpush %v536_v48 }
 0x192   : > { %697 = vpush %v580_v36 }
 0x1c2   : > { %s696_s19 = spop %695 }
 0x1c3   : > { %v583_v49 = vstv %s696_s19  ;;  %s698_s27 = spop %697 }
 0x1c4   : > { %v584_v51 = vsel %vm582_vm0, %v583_v49, 0.0  ;;  %v586_v0 = vstv %s698_s27 }
 0x1c5   : > { %v587_v24 = vsel %vm585_vm1, %v586_v0, 0.0 }
 0x1c6   : > { %v588_v50 = vadd.f32 %v587_v24, %v584_v51 }
 0x1c8   : > { %589 = vst [vmem:[%s177_s25] sm:$0x1] %v588_v50 }
 0x1c9   : > { %864 = shalt.err (!%p861_p8)
}
 0x1ca   : > { %705 = dma.vmem_to_hbm [thread:$0]  (%p984_p11), %s602_s26, 16, %s604_s28, %s591_s13  }
 0x1cb PF: > { %s615_s5 = sand.u32 1, %s895_s9   ;;  %p1507_p9 = scmp.ge.s32.totalorder %s907_s12, 2 }
 0x1cc   : > { %s616_s30 = scalar_lea.sflag [#allocation4], %s615_s5 }
 0x1cd   : > { %p716_p10 = pnand %p1507_p9, %p988_p12 }
 0x1cf   : > { %p717_p1 = pneg %p716_p10 }
 0x1d1   : > { %890 = dma.done.wait (%p717_p1), %s616_s30, 16  }
 0x1d2   : > { %892 = vsyncadd (%p717_p1), %s616_s30, 4294967280  ;;  %p16_p2 = scmp.ge.s32.totalorder %s957_s15, 4   ;;  %s1508_s9 = smov %s899_s10 }
 0x1d3   : > { %s1509_s10 = smov %s903_s11  ;;  %s1510_s11 = smov %s969_s18 }
 0x1d4   : > { %s1511_s12 = smov %s957_s15  ;;  %18 = sbr.rel (!%p16_p2) target bundleno = 6 (0x6), region = 79 }
 0x1d9   :  { %621 = vsyncpa [#allocation3], 1 }
 0x1da   :  { %623 = vsyncpa [#allocation3 + $0x1], 1 }
 0x1db   :  { %624 = vsyncpa [#allocation6], 1 }
 0x1dc   :  { %625 = vsyncpa [#allocation4], 1 }
 0x1dd   :  { %627 = vsyncpa [#allocation4 + $0x1], 1 }

</bundles_post_ra>
